<compile_context>
chip_gen: v7x
topology: tpu7x:2x2x1
jax: 0.10.0
libtpu: 0.0.40
codegen_flags: <defaults>
</compile_context>

<pallas_src>
from functools import partial

import numpy as np
import jax
import jax.numpy as jnp
from jax.experimental import pallas as pl
from jax.experimental.pallas import tpu as pltpu


def _reorg_kernel(x_ref, sel_ref, o_ref, *, hs, ws, W, split_terms):
    # x_ref  : (cb*Ho, hs*W) block;  x_ref[c*Ho + i, a*W + w] = x[c, i*hs + a, w]
    # sel_ref: (ws, W, Wo) bf16 one-hot, resident; sel_ref[b][w, j] = 1 iff w == j*ws + b
    # o_ref  : (hs*ws, cb*Ho, Wo);   o_ref[a*ws + b, r, j] = x_ref[r, a*W + j*ws + b]
    for a in range(hs):
        # Row de-interleave is free: rows a::hs of the original plane are the
        # contiguous lane slab [a*W, (a+1)*W) of this block.
        lhs = x_ref[:, a * W:(a + 1) * W]                       # (R, W)

        if split_terms == 1:
            parts = [lhs]                                        # bf16: 1 MXU pass
        else:
            # Exact 3-term bf16 split of the f32 data (selector side stays a
            # single bf16 pass) -> 3 MXU passes instead of HIGHEST's 6-9.
            parts = []
            r = lhs.astype(jnp.float32)
            for _ in range(split_terms - 1):
                p = r.astype(jnp.bfloat16)
                parts.append(p)
                r = r - p.astype(jnp.float32)
            parts.append(r.astype(jnp.bfloat16))

        for b in range(ws):
            sel_b = sel_ref[b]                                   # (W, Wo) bf16
            y = None
            for p in parts:
                c = jnp.dot(p, sel_b, preferred_element_type=jnp.float32)
                y = c if y is None else y + c                    # (R, Wo) f32, exact
            # Direct store: no reshape, no misaligned lane slice of the result.
            o_ref[a * ws + b] = y.astype(o_ref.dtype)


def _build_selector(W, Wo, ws):
    """(ws, W, Wo) bf16 one-hot: sel[b, w, j] = 1 iff w == j*ws + b."""
    sel = np.zeros((ws, W, Wo), dtype=np.float32)
    j = np.arange(Wo)
    for b in range(ws):
        sel[b, j * ws + b, j] = 1.0
    return jnp.asarray(sel, dtype=jnp.bfloat16)


def _vmem_limit_bytes():
    cap = 64 * 1024 * 1024                      # safe default (v7x per-TC size)
    try:
        cap = int(pltpu.get_tpu_info().vmem_capacity_bytes)
    except Exception:
        pass
    # ~48 MiB on 64-MiB/TC parts, capped at 96 MiB on 128-MiB parts.
    return max(32 * 1024 * 1024, min((cap * 3) // 4, 96 * 1024 * 1024))


def _choose_cb(C, Ho, Wo, hs, ws, itemsize, budget):
    """Largest channel block (divisor of C, layout-legal) fitting the VMEM
    budget, preferring >=4 grid steps (megacore + pipelining), then >=2."""
    W = ws * Wo
    r8 = lambda n: ((n + 7) // 8) * 8
    r128 = lambda n: ((n + 127) // 128) * 128

    def block_bytes(cb):
        rows = r8(cb * Ho)
        in_b = rows * r128(hs * W) * itemsize                    # input block
        out_b = hs * ws * rows * r128(Wo) * itemsize             # output block
        sel_b = ws * r8(W) * r128(Wo) * 2                        # resident selector
        tmp_b = rows * r128(W) * (4 + 3 * 2) + rows * r128(Wo) * 4   # split + acc temps
        return 2 * in_b + 2 * out_b + sel_b + tmp_b              # double-buffered in/out

    # Layout rule: second-to-last block dim (cb*Ho) must be a multiple of 8 or
    # equal the full dim (cb == C).
    divs = [d for d in range(1, C + 1)
            if C % d == 0 and ((d * Ho) % 8 == 0 or d == C)]
    fitting = [d for d in divs if block_bytes(d) <= budget]
    if not fitting:
        # TODO(synk): very large single planes would need an extra Ho-tiling grid axis.
        fitting = [min(divs, key=block_bytes)]
    for min_steps in (4, 2, 1):
        cands = [d for d in fitting if C // d >= min_steps]
        if cands:
            return max(cands)
    return max(fitting)


def reorg(x, stride=2):
    """Pallas equivalent of Reorg(stride).forward(x) for 3-D x of shape (C, H, W)."""
    assert x.ndim == 3
    C, H, W = x.shape
    hs = ws = stride
    assert H % hs == 0 and W % ws == 0
    Ho, Wo = H // hs, W // ws

    # bf16 data goes through the MXU in a single exact pass; everything else is
    # routed via an exact 3-term bf16 split of its f32 value.
    # TODO(synk): integer inputs with |x| >= 2**24 lose bits on the f32 route;
    # NaN/Inf in a row group contaminates that row group (0*Inf on the MXU).
    split_terms = 1 if x.dtype == jnp.bfloat16 else 3

    sel = _build_selector(W, Wo, ws)                 # (ws, W, Wo) bf16, host constant

    vmem_limit = _vmem_limit_bytes()
    cb = _choose_cb(C, Ho, Wo, hs, ws, x.dtype.itemsize,
                    budget=int(vmem_limit * 0.8))
    grid = (C // cb,)

    # Free contiguous reinterpretations (no data movement):
    #   x_rows[c*Ho + i, a*W + w] == x[c, i*hs + a, w]
    x_rows = x.reshape(C * Ho, hs * W)

    out3 = pl.pallas_call(
        partial(_reorg_kernel, hs=hs, ws=ws, W=W, split_terms=split_terms),
        out_shape=jax.ShapeDtypeStruct((hs * ws, C * Ho, Wo), x.dtype),
        grid=grid,
        in_specs=[
            pl.BlockSpec((cb * Ho, hs * W), lambda g: (g, 0)),
            # Constant index_map -> selector is DMA'd once and stays resident.
            pl.BlockSpec((ws, W, Wo), lambda g: (0, 0, 0)),
        ],
        out_specs=pl.BlockSpec((hs * ws, cb * Ho, Wo), lambda g: (0, g, 0)),
        compiler_params=pltpu.CompilerParams(
            dimension_semantics=("parallel",),
            vmem_limit_bytes=vmem_limit),
    )(x_rows, sel)

    # Free contiguous flatten: (a*ws+b, c*Ho+i, j) -> ((a*ws+b)*C + c, i, j),
    # matching the final .view(hs*ws*C, H//hs, W//ws) of the PyTorch module.
    return out3.reshape(hs * ws * C, Ho, Wo)


def _reorg_reference(x, stride=2):
    # Pure-JAX reference mirroring the PyTorch view/transpose chain.
    C, H, W = x.shape
    hs = ws = stride
    Ho, Wo = H // hs, W // ws
    y = x.reshape(C, Ho, hs, Wo, ws)
    y = jnp.transpose(y, (2, 4, 0, 1, 3))       # (hs, ws, C, Ho, Wo)
    return y.reshape(hs * ws * C, Ho, Wo)


if __name__ == "__main__":
    key = jax.random.PRNGKey(0)
    C, H, W = 4, 16, 16
    x = jax.random.normal(key, (C, H, W), dtype=jnp.float32)

    # f32 path (3-term exact bf16 split).
    out = jax.block_until_ready(reorg(x, stride=2))
    ref = _reorg_reference(x, stride=2)
    assert out.shape == (2 * 2 * C, H // 2, W // 2), out.shape
    assert out.dtype == x.dtype
    assert jnp.allclose(out, ref), "Pallas Reorg mismatch vs reference (f32)"

    # bf16 path (single MXU pass).
    xb = x.astype(jnp.bfloat16)
    outb = jax.block_until_ready(reorg(xb, stride=2))
    refb = _reorg_reference(xb, stride=2)
    assert outb.dtype == jnp.bfloat16
    assert jnp.allclose(outb, refb), "Pallas Reorg mismatch vs reference (bf16)"

    print("KERNEL_OK")
</pallas_src>

<mosaic_0001>
module attributes {stable_mosaic.version = 11 : i64} {
  func.func @_reorg_kernel(%arg0: i32, %arg1: memref<8x32xf32, #tpu.memory_space<vmem>>, %arg2: memref<2x16x8xbf16, #tpu.memory_space<vmem>>, %arg3: memref<4x8x8xf32, #tpu.memory_space<vmem>>) attributes {dimension_semantics = [#tpu.dimension_semantics<parallel>], iteration_bounds = array<i64: 4>, scalar_prefetch = 0 : i64, scratch_operands = 0 : i64, tpu.core_type = #tpu.core_type<tc>, window_params = [{transform_indices = @transform_0, window_bounds = array<i64: 8, 32>}, {pipeline_mode = #tpu.pipeline_mode<synchronous>, transform_indices = @transform_1, window_bounds = array<i64: 2, 16, 8>}, {transform_indices = @transform_2, window_bounds = array<i64: 4, 8, 8>}]} {
    %c0 = arith.constant 0 : index
    %c0_0 = arith.constant 0 : index
    %0 = vector.load %arg1[%c0, %c0_0] : memref<8x32xf32, #tpu.memory_space<vmem>>, vector<8x16xf32>
    %1 = arith.truncf %0 : vector<8x16xf32> to vector<8x16xbf16>
    %2 = arith.extf %1 : vector<8x16xbf16> to vector<8x16xf32>
    %3 = arith.subf %0, %2 : vector<8x16xf32>
    %4 = arith.truncf %3 : vector<8x16xf32> to vector<8x16xbf16>
    %5 = arith.extf %4 : vector<8x16xbf16> to vector<8x16xf32>
    %6 = arith.subf %3, %5 : vector<8x16xf32>
    %7 = arith.truncf %6 : vector<8x16xf32> to vector<8x16xbf16>
    %c0_1 = arith.constant 0 : index
    %c0_2 = arith.constant 0 : index
    %c0_3 = arith.constant 0 : index
    %8 = vector.load %arg2[%c0_1, %c0_2, %c0_3] : memref<2x16x8xbf16, #tpu.memory_space<vmem>>, vector<1x16x8xbf16>
    %9 = vector.shape_cast %8 : vector<1x16x8xbf16> to vector<16x8xbf16>
    %cst = arith.constant dense<0.000000e+00> : vector<8x8xf32>
    %10 = tpu.matmul %1, %9, %cst {dimension_numbers = #tpu.dot_dimension_numbers<[1], [0], [0], [1], [0, 0, 1, 1], [], []>} : vector<8x16xbf16>, vector<16x8xbf16>, vector<8x8xf32> -> vector<8x8xf32>
    %cst_4 = arith.constant dense<0.000000e+00> : vector<8x8xf32>
    %11 = tpu.matmul %4, %9, %cst_4 {dimension_numbers = #tpu.dot_dimension_numbers<[1], [0], [0], [1], [0, 0, 1, 1], [], []>} : vector<8x16xbf16>, vector<16x8xbf16>, vector<8x8xf32> -> vector<8x8xf32>
    %12 = arith.addf %10, %11 : vector<8x8xf32>
    %cst_5 = arith.constant dense<0.000000e+00> : vector<8x8xf32>
    %13 = tpu.matmul %7, %9, %cst_5 {dimension_numbers = #tpu.dot_dimension_numbers<[1], [0], [0], [1], [0, 0, 1, 1], [], []>} : vector<8x16xbf16>, vector<16x8xbf16>, vector<8x8xf32> -> vector<8x8xf32>
    %14 = arith.addf %12, %13 : vector<8x8xf32>
    %c0_6 = arith.constant 0 : index
    %c0_7 = arith.constant 0 : index
    %c0_8 = arith.constant 0 : index
    %15 = vector.load %arg3[%c0_6, %c0_7, %c0_8] : memref<4x8x8xf32, #tpu.memory_space<vmem>>, vector<1x8x8xf32>
    %16 = vector.shape_cast %15 : vector<1x8x8xf32> to vector<8x8xf32>
    %17 = vector.shape_cast %14 : vector<8x8xf32> to vector<1x8x8xf32>
    tpu.vector_store %arg3[%c0_6, %c0_7, %c0_8], %17 {strides = array<i32>} : memref<4x8x8xf32, #tpu.memory_space<vmem>>, vector<1x8x8xf32>,
    %c1 = arith.constant 1 : index
    %c0_9 = arith.constant 0 : index
    %c0_10 = arith.constant 0 : index
    %18 = vector.load %arg2[%c1, %c0_9, %c0_10] : memref<2x16x8xbf16, #tpu.memory_space<vmem>>, vector<1x16x8xbf16>
    %19 = vector.shape_cast %18 : vector<1x16x8xbf16> to vector<16x8xbf16>
    %cst_11 = arith.constant dense<0.000000e+00> : vector<8x8xf32>
    %20 = tpu.matmul %1, %19, %cst_11 {dimension_numbers = #tpu.dot_dimension_numbers<[1], [0], [0], [1], [0, 0, 1, 1], [], []>} : vector<8x16xbf16>, vector<16x8xbf16>, vector<8x8xf32> -> vector<8x8xf32>
    %cst_12 = arith.constant dense<0.000000e+00> : vector<8x8xf32>
    %21 = tpu.matmul %4, %19, %cst_12 {dimension_numbers = #tpu.dot_dimension_numbers<[1], [0], [0], [1], [0, 0, 1, 1], [], []>} : vector<8x16xbf16>, vector<16x8xbf16>, vector<8x8xf32> -> vector<8x8xf32>
    %22 = arith.addf %20, %21 : vector<8x8xf32>
    %cst_13 = arith.constant dense<0.000000e+00> : vector<8x8xf32>
    %23 = tpu.matmul %7, %19, %cst_13 {dimension_numbers = #tpu.dot_dimension_numbers<[1], [0], [0], [1], [0, 0, 1, 1], [], []>} : vector<8x16xbf16>, vector<16x8xbf16>, vector<8x8xf32> -> vector<8x8xf32>
    %24 = arith.addf %22, %23 : vector<8x8xf32>
    %c1_14 = arith.constant 1 : index
    %c0_15 = arith.constant 0 : index
    %c0_16 = arith.constant 0 : index
    %25 = vector.load %arg3[%c1_14, %c0_15, %c0_16] : memref<4x8x8xf32, #tpu.memory_space<vmem>>, vector<1x8x8xf32>
    %26 = vector.shape_cast %25 : vector<1x8x8xf32> to vector<8x8xf32>
    %27 = vector.shape_cast %24 : vector<8x8xf32> to vector<1x8x8xf32>
    tpu.vector_store %arg3[%c1_14, %c0_15, %c0_16], %27 {strides = array<i32>} : memref<4x8x8xf32, #tpu.memory_space<vmem>>, vector<1x8x8xf32>,
    %c0_17 = arith.constant 0 : index
    %c16 = arith.constant 16 : index
    %28 = vector.load %arg1[%c0_17, %c16] : memref<8x32xf32, #tpu.memory_space<vmem>>, vector<8x16xf32>
    %29 = arith.truncf %28 : vector<8x16xf32> to vector<8x16xbf16>
    %30 = arith.extf %29 : vector<8x16xbf16> to vector<8x16xf32>
    %31 = arith.subf %28, %30 : vector<8x16xf32>
    %32 = arith.truncf %31 : vector<8x16xf32> to vector<8x16xbf16>
    %33 = arith.extf %32 : vector<8x16xbf16> to vector<8x16xf32>
    %34 = arith.subf %31, %33 : vector<8x16xf32>
    %35 = arith.truncf %34 : vector<8x16xf32> to vector<8x16xbf16>
    %c0_18 = arith.constant 0 : index
    %c0_19 = arith.constant 0 : index
    %c0_20 = arith.constant 0 : index
    %36 = vector.load %arg2[%c0_18, %c0_19, %c0_20] : memref<2x16x8xbf16, #tpu.memory_space<vmem>>, vector<1x16x8xbf16>
    %37 = vector.shape_cast %36 : vector<1x16x8xbf16> to vector<16x8xbf16>
    %cst_21 = arith.constant dense<0.000000e+00> : vector<8x8xf32>
    %38 = tpu.matmul %29, %37, %cst_21 {dimension_numbers = #tpu.dot_dimension_numbers<[1], [0], [0], [1], [0, 0, 1, 1], [], []>} : vector<8x16xbf16>, vector<16x8xbf16>, vector<8x8xf32> -> vector<8x8xf32>
    %cst_22 = arith.constant dense<0.000000e+00> : vector<8x8xf32>
    %39 = tpu.matmul %32, %37, %cst_22 {dimension_numbers = #tpu.dot_dimension_numbers<[1], [0], [0], [1], [0, 0, 1, 1], [], []>} : vector<8x16xbf16>, vector<16x8xbf16>, vector<8x8xf32> -> vector<8x8xf32>
    %40 = arith.addf %38, %39 : vector<8x8xf32>
    %cst_23 = arith.constant dense<0.000000e+00> : vector<8x8xf32>
    %41 = tpu.matmul %35, %37, %cst_23 {dimension_numbers = #tpu.dot_dimension_numbers<[1], [0], [0], [1], [0, 0, 1, 1], [], []>} : vector<8x16xbf16>, vector<16x8xbf16>, vector<8x8xf32> -> vector<8x8xf32>
    %42 = arith.addf %40, %41 : vector<8x8xf32>
    %c2 = arith.constant 2 : index
    %c0_24 = arith.constant 0 : index
    %c0_25 = arith.constant 0 : index
    %43 = vector.load %arg3[%c2, %c0_24, %c0_25] : memref<4x8x8xf32, #tpu.memory_space<vmem>>, vector<1x8x8xf32>
    %44 = vector.shape_cast %43 : vector<1x8x8xf32> to vector<8x8xf32>
    %45 = vector.shape_cast %42 : vector<8x8xf32> to vector<1x8x8xf32>
    tpu.vector_store %arg3[%c2, %c0_24, %c0_25], %45 {strides = array<i32>} : memref<4x8x8xf32, #tpu.memory_space<vmem>>, vector<1x8x8xf32>,
    %c1_26 = arith.constant 1 : index
    %c0_27 = arith.constant 0 : index
    %c0_28 = arith.constant 0 : index
    %46 = vector.load %arg2[%c1_26, %c0_27, %c0_28] : memref<2x16x8xbf16, #tpu.memory_space<vmem>>, vector<1x16x8xbf16>
    %47 = vector.shape_cast %46 : vector<1x16x8xbf16> to vector<16x8xbf16>
    %cst_29 = arith.constant dense<0.000000e+00> : vector<8x8xf32>
    %48 = tpu.matmul %29, %47, %cst_29 {dimension_numbers = #tpu.dot_dimension_numbers<[1], [0], [0], [1], [0, 0, 1, 1], [], []>} : vector<8x16xbf16>, vector<16x8xbf16>, vector<8x8xf32> -> vector<8x8xf32>
    %cst_30 = arith.constant dense<0.000000e+00> : vector<8x8xf32>
    %49 = tpu.matmul %32, %47, %cst_30 {dimension_numbers = #tpu.dot_dimension_numbers<[1], [0], [0], [1], [0, 0, 1, 1], [], []>} : vector<8x16xbf16>, vector<16x8xbf16>, vector<8x8xf32> -> vector<8x8xf32>
    %50 = arith.addf %48, %49 : vector<8x8xf32>
    %cst_31 = arith.constant dense<0.000000e+00> : vector<8x8xf32>
    %51 = tpu.matmul %35, %47, %cst_31 {dimension_numbers = #tpu.dot_dimension_numbers<[1], [0], [0], [1], [0, 0, 1, 1], [], []>} : vector<8x16xbf16>, vector<16x8xbf16>, vector<8x8xf32> -> vector<8x8xf32>
    %52 = arith.addf %50, %51 : vector<8x8xf32>
    %c3 = arith.constant 3 : index
    %c0_32 = arith.constant 0 : index
    %c0_33 = arith.constant 0 : index
    %53 = vector.load %arg3[%c3, %c0_32, %c0_33] : memref<4x8x8xf32, #tpu.memory_space<vmem>>, vector<1x8x8xf32>
    %54 = vector.shape_cast %53 : vector<1x8x8xf32> to vector<8x8xf32>
    %55 = vector.shape_cast %52 : vector<8x8xf32> to vector<1x8x8xf32>
    tpu.vector_store %arg3[%c3, %c0_32, %c0_33], %55 {strides = array<i32>} : memref<4x8x8xf32, #tpu.memory_space<vmem>>, vector<1x8x8xf32>,
    return
  }
  func.func @transform_0(%arg0: i32) -> (i32, i32) {
    %c0_i32 = arith.constant 0 : i32
    %c0_i32_0 = arith.constant 0 : i32
    return %arg0, %c0_i32 : i32, i32
  }
  func.func @transform_1(%arg0: i32) -> (i32, i32, i32) {
    %c0_i32 = arith.constant 0 : i32
    %c0_i32_0 = arith.constant 0 : i32
    %c0_i32_1 = arith.constant 0 : i32
    %c0_i32_2 = arith.constant 0 : i32
    return %c0_i32, %c0_i32_0, %c0_i32_1 : i32, i32, i32
  }
  func.func @transform_2(%arg0: i32) -> (i32, i32, i32) {
    %c0_i32 = arith.constant 0 : i32
    %c0_i32_0 = arith.constant 0 : i32
    %c0_i32_1 = arith.constant 0 : i32
    return %c0_i32, %arg0, %c0_i32_0 : i32, i32, i32
  }
}

</mosaic_0001>

<bundles_post_ra>
// kernel: tpu_custom_call.1
= control target key start
LH: loop header
LB: loop body
LE: loop exit
PB: predicated region body
PF: predicated region fallthrough
CT: control target
= control target key end

     0   :  { %7 = vsyncpa [#allocation3], 0  ;;  %s1318_s0 = inlined_call_operand.hbm [shape: f32[32,32], index: 0, kind: input, shape index: {}]   ;;  %s1319_s1 = inlined_call_operand.vmem [shape: bf16[2,16,8], index: 1, kind: input, shape index: {}]   ;;  %s1320_s2 = inlined_call_operand.vmem [shape: f32[4,32,8], index: 2, kind: output, shape index: {}]  }
   0x1   :  { %9 = vsyncpa [#allocation3 + $0x1], 0  ;;  %s1134_s9 = smov 0   ;;  %s1136_s10 = smov 0  }
   0x2   :  { %s1138_s11 = smov 0   ;;  %s1140_s12 = smov 0  }
   0x3 LB: > { %s1153_s13 = sadd.s32 4294967295, %s1113_s12   ;;  %s1156_s14 = sadd.s32 1, %s1113_s12   ;;  %s1113_s12 = sphi %s1140_s12, %s1331_s12   ;;  %s1109_s11 = sphi %s1138_s11, %s1330_s11   ;;  %s1105_s10 = sphi %s1136_s10, %s1329_s10   ;;  %s1101_s9 = sphi %s1134_s9, %s1328_s9  }
   0x4   : > { %s19_s15 = ssub.s32 %s1113_s12, %s1156_s14  ;;  %s22_s16 = sadd.s32 1, %s1109_s11 }
   0x5   : > { %p20_p0 = scmp.eq.s32.totalorder %s19_s15, 0  ;;  %p29_p1 = scmp.ne.s32.totalorder %s1109_s11, %s1105_s10 }
   0x6   : > { %p30_p2 = scmp.eq.s32.totalorder %s1113_s12, 0  ;;  %p35_p3 = scmp.ne.s32.totalorder %s1105_s10, %s1101_s9 }
   0x7   : > { %s1166_s17 = scalar_select %p20_p0, %s1109_s11, %s22_s16  }
   0x8   : > { %p1168_p4 = por %p30_p2, %p29_p1  ;;  %p36_p5 = scmp.eq.s32.totalorder %s1153_s13, 0 }
   0x9   : > { %p80_p6 = scmp.eq.s32.totalorder %s1153_s13, 3  ;;  %p1009_p8 = scmp.lt.s32.totalorder %s1113_s12, 4 }
   0xa   : > { %p1174_p7 = por %p36_p5, %p35_p3  ;;  %s109_s21 = sand.u32 1, %s1109_s11  }
   0xb   : > { %p1179_p9 = por %p80_p6, %p29_p1  ;;  %s843_s22 = sshll.u32 %s109_s21, 3 }
   0xc   : > { %s844_s23 = sshll.u32 %s1113_s12, 7  ;;  %s113_s27 = scalar_lea.vmem [#allocation2], %s843_s22 }
   0xd   : > { %s1323_s20 = scalar_select %p1179_p9, 1, 0 }
   0xe   : > { %s1188_s26 = scalar_lea.hbm %s1318_s0, %s844_s23  ;;  %s120_s28 = sshll.u32 %s113_s27, 4  ;;  %s1190_s28 = int_to_ptr.vmem [resolvable:$true] %s120_s28 }
   0xf   : > { %p1194_p10 = pnand %p1009_p8, %p1168_p4  ;;  %s110_s30 = scalar_lea.sflag [#allocation3], %s109_s21 }
  0x10   : > { %s1049_s3 = scalar_lea.hbm %s1188_s26, 128  ;;  %s1054_s6 = scalar_lea.hbm %s1318_s0, 512 }
  0x11   : > { %p1050_p13 = scmp.ne.s32.totalorder %s1188_s26, %s1049_s3  ;;  %p1051_p0 = pneg %p1194_p10 }
  0x12   : > { %p1055_p3 = scmp.lt.u32.totalorder %s1188_s26, %s1318_s0  ;;  %p1056_p4 = scmp.lt.u32.totalorder %s1054_s6, %s1049_s3 }
  0x13   : > { %p1052_p1 = pnand %p1051_p0, %p1050_p13  ;;  %p1058_p6 = scmp.lt.u32.totalorder %s1049_s3, %s1188_s26 }
  0x14   : > { %p1057_p5 = por %p1056_p4, %p1055_p3 }
  0x15   : > { %p1053_p2 = pneg %p1052_p1 }
  0x16   : > { %p1059_p8 = por %p1058_p6, %p1057_p5 }
  0x18   : > { %p1060_p11 = pnand %p1059_p8, %p1053_p2 }
  0x1a   : > { %1063 = shalt.err (!%p1060_p11)
}
  0x1b   : > { %s1064_s9 = scalar_lea.vmem %s1190_s28, 128  ;;  %s1115_s15 = smov [#allocation2]  }
  0x1c   : > { %p1065_p13 = scmp.ne.s32.totalorder %s1190_s28, %s1064_s9  ;;  %s1069_s16 = sshll.u32 %s1115_s15, 4  ;;  %s1070_s16 = int_to_ptr.vmem [resolvable:$false] %s1069_s16 }
  0x1d   : > { %s1071_s18 = scalar_lea.vmem %s1070_s16, 256  ;;  %p1072_p9 = scmp.lt.s32.totalorder %s1190_s28, %s1070_s16 }
  0x1e   : > { %p1067_p1 = pnand %p1065_p13, %p1051_p0  ;;  %p1073_p3 = scmp.lt.s32.totalorder %s1071_s18, %s1064_s9 }
  0x20   : > { %p1068_p12 = pneg %p1067_p1  ;;  %p1074_p4 = por %p1073_p3, %p1072_p9 }
  0x22   : > { %p1075_p5 = pnand %p1074_p4, %p1068_p12 }
  0x24   : > { %1078 = shalt.err (!%p1075_p5)
}
  0x25   : > { %1008 = dma.hbm_to_vmem [thread:$0]  (!%p1194_p10), %s1188_s26, 128, %s1190_s28, %s110_s30  }
  0x26   : > { %p1325_p11 = scmp.lt.s32.totalorder %s1113_s12, 5  ;;  %p1326_p2 = scmp.ge.s32.totalorder %s1113_s12, 1 }
  0x28   : > { %p126_p0 = pnand %p1326_p2, %p1325_p11 }
  0x29   : > { %s1230_s21 = sand.u32 (!%p126_p0), 1, %s1105_s10  }
  0x2a   : > { %129 = sbr.rel (%p126_p0) target bundleno = 419 (0x1a3), region = 28  ;;  %s846_s22 = sshll.u32 (!%p126_p0), %s1230_s21, 3 }
  0x2b   : > { %s132_s23 = scalar_lea.sflag (!%p126_p0), [#allocation3], %s1230_s21  ;;  %s135_s24 = scalar_lea.vmem (!%p126_p0), [#allocation2], %s846_s22 }
  0x31   : > { %1096 = dma.done.wait (%p1174_p7), %s132_s23, 128  }
  0x32   : > { %1098 = vsyncadd (%p1174_p7), %s132_s23, 4294967168  ;;  %v1116_v0 = vmov 0.0   ;;  %vm1117_vm0 = vmmov 0   ;;  %v437_v1 = vld [vmem:[%s135_s24] sm:$0xff]  ;;  %vm172_vm1 = vcmask 130048   ;;  %s1118_s27 = smov 112  }
  0x33   : > { %899 = vmatprep.subr.bf16.mxu0 %v1116_v0  ;;  %917 = vmatprep.subr.bf16.mxu1 %v1116_v0  ;;  %v438_v2 = vpack.c.bf16 %v437_v1, %v437_v1  ;;  %v1045_v3 = vld [vmem:[%s1319_s1] sm:$0xff]   ;;  %v1046_v4 = vld [vmem:[%s1319_s1 + $0x8] sm:$0xff]   ;;  %s847_s4 = sshll.u32 %s1230_s21, 5  ;;  %vm303_vm2 = vcmask 64512   ;;  %p1327_p7 = scmp.ne.s32.totalorder %s1323_s20, 0 }
  0x34   : > { %901 = vmatprep.mubr.msk.bf16.mxu0 %vm1117_vm0, %v1116_v0  ;;  %919 = vmatprep.mubr.msk.bf16.mxu1 %vm1117_vm0, %v1116_v0  ;;  %v1047_v11 = vld [vmem:[%s1319_s1] sm:$0xff]   ;;  %v1048_v12 = vld [vmem:[%s1319_s1 + $0x8] sm:$0xff]   ;;  %s154_s5 = scalar_lea.vmem [#allocation4], %s847_s4  ;;  %s872_s6 = sshll.u32 (%p1327_p7), %s1153_s13, 3 }
  0x35   : > { %v439_v5 = vunpack.c.l.bf16 %v438_v2  ;;  %900 = vmatpush3.bf16.msra.mxu0 %v1045_v3  ;;  %918 = vmatpush3.bf16.msra.mxu1 %v1046_v4  ;;  %s733_s9 = scalar_lea.vmem (%p1327_p7), %s1320_s2, %s872_s6 }
  0x36   : > { %905 = vmatprep.subr.bf16.mxu0 %v1116_v0  ;;  %923 = vmatprep.subr.bf16.mxu1 %v1116_v0 }
  0x37   : > { %v440_v6 = vsub.f32 %v437_v1, %v439_v5 }
  0x39   : > { %v441_v7 = vpack.c.bf16 %v440_v6, %v440_v6 }
  0x3b   : > { %448 = vrot.lane.b32.xlu0 %v441_v7, %s1118_s27  ;;  %v442_v8 = vunpack.c.l.bf16 %v441_v7  ;;  %902 = vmatmul.mubr.msk.bf16.vlgmr.msra.gmra.mrb[0].mxu0 %vm172_vm1, %v441_v7 }
  0x3c   : > { %920 = vmatmul.mubr.msk.bf16.vlgmr.msra.gmra.mrb[0].mxu1 %vm172_vm1, %v441_v7  ;;  %906 = vmatpush3.bf16.msra.mxu0 %v1045_v3 }
  0x3d   : > { %v443_v9 = vsub.f32 %v440_v6, %v442_v8  ;;  %924 = vmatpush3.bf16.msra.mxu1 %v1046_v4  ;;  %907 = vmatprep.mubr.msk.bf16.mxu0 %vm1117_vm0, %v1116_v0 }
  0x3e   : > { %925 = vmatprep.mubr.msk.bf16.mxu1 %vm1117_vm0, %v1116_v0  ;;  %911 = vmatprep.subr.bf16.mxu0 %v1116_v0 }
  0x3f   : > { %500 = vrot.lane.b32.xlu0 %v438_v2, %s1118_s27  ;;  %v444_v10 = vpack.c.bf16 %v443_v9, %v443_v9  ;;  %929 = vmatprep.subr.bf16.mxu1 %v1116_v0 }
  0x41   : > { %546 = vrot.lane.b32.xlu1 %v444_v10, %s1118_s27 }
  0x47   : > { %908 = vmatmul.mubr.msk.bf16.vlgmr.msra.gmra.mrb[0].mxu0 %vm172_vm1, %v438_v2 }
  0x48   : > { %926 = vmatmul.mubr.msk.bf16.vlgmr.msra.gmra.mrb[0].mxu1 %vm172_vm1, %v438_v2  ;;  %912 = vmatpush3.bf16.msra.mxu0 %v1045_v3 }
  0x49   : > { %930 = vmatpush3.bf16.msra.mxu1 %v1046_v4  ;;  %913 = vmatprep.mubr.msk.bf16.mxu0 %vm1117_vm0, %v1116_v0 }
  0x4a   : > { %931 = vmatprep.mubr.msk.bf16.mxu1 %vm1117_vm0, %v1116_v0  ;;  %935 = vmatprep.subr.bf16.mxu0 %v1116_v0 }
  0x4b   : > { %953 = vmatprep.subr.bf16.mxu1 %v1116_v0 }
  0x53   : > { %914 = vmatmul.mubr.msk.bf16.vlgmr.msra.gmra.mrb[0].mxu0 %vm172_vm1, %v444_v10 }
  0x54   : > { %932 = vmatmul.mubr.msk.bf16.vlgmr.msra.gmra.mrb[0].mxu1 %vm172_vm1, %v444_v10  ;;  %936 = vmatpush3.bf16.msra.mxu0 %v1047_v11 }
  0x55   : > { %954 = vmatpush3.bf16.msra.mxu1 %v1048_v12  ;;  %937 = vmatprep.mubr.msk.bf16.mxu0 %vm1117_vm0, %v1116_v0 }
  0x56   : > { %941 = vmatprep.subr.bf16.mxu0 %v1116_v0  ;;  %955 = vmatprep.mubr.msk.bf16.mxu1 %vm1117_vm0, %v1116_v0 }
  0x57   : > { %959 = vmatprep.subr.bf16.mxu1 %v1116_v0 }
  0xad   : > { %v449_v13 = vpop.permute.xlu0 %448 }
  0xae   : > { %938 = vmatmul.mubr.msk.bf16.vlgmr.msra.gmra.mrb[4].mxu0 %vm172_vm1, %v449_v13  ;;  %956 = vmatmul.mubr.msk.bf16.vlgmr.msra.gmra.mrb[4].mxu1 %vm172_vm1, %v449_v13 }
  0xaf   : > { %942 = vmatpush3.bf16.msra.mxu0 %v1047_v11  ;;  %960 = vmatpush3.bf16.msra.mxu1 %v1048_v12 }
  0xb0   : > { %943 = vmatprep.mubr.msk.bf16.mxu0 %vm1117_vm0, %v1116_v0  ;;  %947 = vmatprep.subr.bf16.mxu0 %v1116_v0 }
  0xb1   : > { %961 = vmatprep.mubr.msk.bf16.mxu1 %vm1117_vm0, %v1116_v0  ;;  %965 = vmatprep.subr.bf16.mxu1 %v1116_v0  ;;  %v501_v14 = vpop.permute.xlu0 %500 }
  0xb3   : > { %v547_v15 = vpop.permute.xlu1 %546 }
  0xba   : > { %944 = vmatmul.mubr.msk.bf16.vlgmr.msra.gmra.mrb[4].mxu0 %vm172_vm1, %v501_v14  ;;  %962 = vmatmul.mubr.msk.bf16.vlgmr.msra.gmra.mrb[4].mxu1 %vm172_vm1, %v501_v14 }
  0xbb   : > { %948 = vmatpush3.bf16.msra.mxu0 %v1047_v11  ;;  %966 = vmatpush3.bf16.msra.mxu1 %v1048_v12 }
  0xbc   : > { %949 = vmatprep.mubr.msk.bf16.mxu0 %vm1117_vm0, %v1116_v0  ;;  %967 = vmatprep.mubr.msk.bf16.mxu1 %vm1117_vm0, %v1116_v0 }
  0xc6   : > { %950 = vmatmul.mubr.msk.bf16.vlgmr.msra.gmra.mrb[4].mxu0 %vm172_vm1, %v547_v15  ;;  %968 = vmatmul.mubr.msk.bf16.vlgmr.msra.gmra.mrb[4].mxu1 %vm172_vm1, %v547_v15 }
 0x126   : > { %v296_v16 = vpop.f32.mrb[0].mxu0 }
 0x127   : > { %304 = vst.msk [vmem:[%s154_s5] sm:$0xff] %vm303_vm2, %v296_v16  ;;  %v428_v17 = vpop.f32.mrb[0].mxu1  ;;  %v915_v18 = vpop.f32.mrb[1].mxu0 }
 0x128   : > { %858 = vst.msk [vmem:[%s154_s5 + $0x8] sm:$0xff] %vm303_vm2, %v428_v17  ;;  %v933_v19 = vpop.f32.mrb[1].mxu1  ;;  %v299_v20 = vpop.f32.mrb[2].mxu0 }
 0x129   : > { %v431_v21 = vpop.f32.mrb[2].mxu1  ;;  %v916_v22 = vpop.f32.mrb[3].mxu0 }
 0x12a   : > { %v934_v23 = vpop.f32.mrb[3].mxu1 }
 0x12e   : > { %v767_v32 = vld [vmem:[%s154_s5] sm:$0xff] (%p1327_p7) }
 0x12f   : > { %v769_v33 = vld [vmem:[%s154_s5 + $0x8] sm:$0xff] (%p1327_p7)  ;;  %768 = vst [vmem:[%s733_s9] sm:$0xff] (%p1327_p7), %v767_v32 }
 0x130   : > { %770 = vst [vmem:[%s733_s9 + $0x20] sm:$0xff] (%p1327_p7), %v769_v33 }
 0x196   : > { %731 = sbr.rel (!%p1327_p7) target bundleno = 419 (0x1a3), region = 36 }
 0x199   : > { %v585_v24 = vpop.f32.mrb[4].mxu0  ;;  %v716_v25 = vpop.f32.mrb[4].mxu1 }
 0x19a   : > { %863 = vst.msk [vmem:[%s154_s5 + $0x10] sm:$0xff] %vm303_vm2, %v585_v24  ;;  %870 = vst.msk [vmem:[%s154_s5 + $0x18] sm:$0xff] %vm303_vm2, %v716_v25  ;;  %v951_v26 = vpop.f32.mrb[5].mxu0  ;;  %v969_v27 = vpop.f32.mrb[5].mxu1 }
 0x19b   : > { %v588_v28 = vpop.f32.mrb[6].mxu0  ;;  %v719_v29 = vpop.f32.mrb[6].mxu1 }
 0x19c   : > { %v952_v30 = vpop.f32.mrb[7].mxu0  ;;  %v970_v31 = vpop.f32.mrb[7].mxu1 }
 0x1a1   : > { %v771_v34 = vld [vmem:[%s154_s5 + $0x10] sm:$0xff]  ;;  %v773_v35 = vld [vmem:[%s154_s5 + $0x18] sm:$0xff] }
 0x1a2   : > { %772 = vst [vmem:[%s733_s9 + $0x40] sm:$0xff] %v771_v34  ;;  %774 = vst [vmem:[%s733_s9 + $0x60] sm:$0xff] %v773_v35 }
 0x1a3 PF: > { %p12_p9 = scmp.ge.s32.totalorder %s1156_s14, 6   ;;  %s1328_s9 = smov %s1105_s10 }
 0x1a4   : > { %s1329_s10 = smov %s1109_s11  ;;  %s1330_s11 = smov %s1166_s17 }
 0x1a5   : > { %s1331_s12 = smov %s1156_s14  ;;  %14 = sbr.rel (!%p12_p9) target bundleno = 3 (0x3), region = 110 }
 0x1ac   :  { %790 = vsyncpa [#allocation3], 1 }
 0x1ad   :  { %792 = vsyncpa [#allocation3 + $0x1], 1 }

</bundles_post_ra>
